<compile_context>
chip_gen: v5e
topology: v5e:2x2
jax: 0.10.0
libtpu: 0.0.40
codegen_flags: <defaults>
</compile_context>

<pallas_src>
import functools

import jax
import jax.numpy as jnp
from jax import lax
from jax.experimental import pallas as pl
from jax.experimental.pallas import tpu as pltpu

BN_EPS = 1e-5   # PyTorch BatchNorm1d default eps
LANE = 128


def _round_up(x, m):
    return (x + m - 1) // m * m


def encoder_cnn_kernel(x_ref, wt_ref, b_ref, gamma_ref, beta_ref, out_ref,
                       acc_ref, *, inv_hw):
    """One C-tile step of: global-avg-pool -> Linear -> BatchNorm1d.

    x_ref:     (N, HW, tc) bf16  channel-tile of the feature maps (C on lanes)
    wt_ref:    (tc, E)     bf16  channel-tile of the transposed linear weight
    b_ref:     (1, E)      f32   linear bias
    gamma_ref: (1, E)      f32   BN weight
    beta_ref:  (1, E)      f32   BN bias
    out_ref:   (N, E)      f32   output (written once, at the last step)
    acc_ref:   (N, E)      f32   persistent accumulator of sum_s x[:, s, :] @ W^T
    """
    k = pl.program_id(0)

    @pl.when(k == 0)
    def _init():
        acc_ref[...] = jnp.zeros_like(acc_ref)

    # Spatial *sum* (pool scale folded into finalize). Upcast after load: v5e's
    # VPU has no bf16 arithmetic; the MXU contraction accumulates in f32.
    partial = jnp.sum(x_ref[...].astype(jnp.float32), axis=1)            # (N, tc)
    acc_ref[...] += jnp.dot(partial, wt_ref[...].astype(jnp.float32),
                            preferred_element_type=jnp.float32)          # (N, E)

    @pl.when(k == pl.num_programs(0) - 1)
    def _finalize():
        # Pool scale + bias, then BatchNorm1d with training-mode batch stats
        # (matches the PyTorch module's default-mode forward).
        # TODO(synk): eval-mode EncoderCNN uses running_mean/running_var; thread
        # them in and select that path if this kernel serves inference.
        feat = acc_ref[...] * inv_hw + b_ref[...]                        # (N, E)
        mu = jnp.mean(feat, axis=0, keepdims=True)
        var = jnp.mean((feat - mu) ** 2, axis=0, keepdims=True)
        xhat = (feat - mu) * lax.rsqrt(var + BN_EPS)
        out_ref[...] = gamma_ref[...] * xhat + beta_ref[...]


def encoder_cnn_forward(features_nchw, linear_w, linear_b, bn_gamma, bn_beta):
    """features_nchw: (N, C, H, W) -- stand-in for the ResNet-152 layer4 output."""
    N, C, H, W = features_nchw.shape
    E = linear_w.shape[0]
    HW = H * W

    # Lane-dense layout: channels last.
    x = jnp.transpose(features_nchw.reshape(N, C, HW), (0, 2, 1))        # (N, HW, C)

    # Pad E to a lane multiple (unmasked output stores); pick a lane-multiple C
    # tile and pad C up to it (zero channels / zero weight rows contribute 0).
    e_pad = _round_up(E, LANE)
    tc = min(512, _round_up(C, LANE))
    c_pad = _round_up(C, tc)
    num_c_tiles = c_pad // tc

    x = jnp.pad(x, ((0, 0), (0, 0), (0, c_pad - C))).astype(jnp.bfloat16)
    wt = jnp.pad(linear_w.T.astype(jnp.float32),
                 ((0, c_pad - C), (0, e_pad - E))).astype(jnp.bfloat16)
    b = jnp.pad(linear_b.astype(jnp.float32), (0, e_pad - E)).reshape(1, e_pad)
    gamma = jnp.pad(bn_gamma.astype(jnp.float32), (0, e_pad - E)).reshape(1, e_pad)
    beta = jnp.pad(bn_beta.astype(jnp.float32), (0, e_pad - E)).reshape(1, e_pad)

    kernel = functools.partial(encoder_cnn_kernel, inv_hw=1.0 / float(HW))

    out = pl.pallas_call(
        kernel,
        out_shape=jax.ShapeDtypeStruct((N, e_pad), jnp.float32),
        grid_spec=pltpu.PrefetchScalarGridSpec(
            num_scalar_prefetch=0,
            grid=(num_c_tiles,),
            in_specs=[
                pl.BlockSpec((N, HW, tc), lambda k: (0, 0, k)),
                pl.BlockSpec((tc, e_pad), lambda k: (k, 0)),
                # Constant index maps: bias/gamma/beta stay VMEM-resident.
                pl.BlockSpec((1, e_pad), lambda k: (0, 0)),
                pl.BlockSpec((1, e_pad), lambda k: (0, 0)),
                pl.BlockSpec((1, e_pad), lambda k: (0, 0)),
            ],
            out_specs=pl.BlockSpec((N, e_pad), lambda k: (0, 0)),
            scratch_shapes=[pltpu.VMEM((N, e_pad), jnp.float32)],
        ),
        compiler_params=pltpu.CompilerParams(
            # Single grid axis is the C reduction -> accumulator resident.
            dimension_semantics=("arbitrary",),
            # Working set is a few MiB; 32 MiB is safe on v5e/v6e/v7x alike.
            vmem_limit_bytes=32 * 1024 * 1024,
        ),
    )(x, wt, b, gamma, beta)

    return out[:, :E]


def reference_forward(features_nchw, linear_w, linear_b, bn_gamma, bn_beta):
    """Pure-JAX reference matching PyTorch semantics (training-mode BN).

    Inputs/weights are quantized to bf16 exactly like the kernel path so the
    comparison isolates kernel correctness from input-quantization rounding.
    """
    N, C, H, W = features_nchw.shape
    x = features_nchw.astype(jnp.bfloat16).astype(jnp.float32)
    w = linear_w.astype(jnp.bfloat16).astype(jnp.float32)
    pooled = jnp.mean(x.reshape(N, C, H * W), axis=-1)
    feat = pooled @ w.T + linear_b
    mu = jnp.mean(feat, axis=0, keepdims=True)
    var = jnp.mean((feat - mu) ** 2, axis=0, keepdims=True)
    return bn_gamma * (feat - mu) / jnp.sqrt(var + BN_EPS) + bn_beta


def _make_inputs(key, N, C, H, W, E):
    k_x, k_w, k_b = jax.random.split(key, 3)
    x = jax.random.normal(k_x, (N, C, H, W), dtype=jnp.float32)
    # nn.Linear(C, E): uniform(-1/sqrt(C), 1/sqrt(C)) init.
    bound = 1.0 / float(C) ** 0.5
    linear_w = jax.random.uniform(k_w, (E, C), jnp.float32, -bound, bound)
    linear_b = jax.random.uniform(k_b, (E,), jnp.float32, -bound, bound)
    # nn.BatchNorm1d default init: weight=1, bias=0.
    bn_gamma = jnp.ones((E,), jnp.float32)
    bn_beta = jnp.zeros((E,), jnp.float32)
    return x, linear_w, linear_b, bn_gamma, bn_beta


if __name__ == "__main__":
    key = jax.random.PRNGKey(0)
    key_small, key_big = jax.random.split(key)

    # Small smoke-test shapes: batch=2, channels=4, spatial 16x16, embed=32.
    N, C, H, W, E = 2, 4, 16, 16, 32
    args = _make_inputs(key_small, N, C, H, W, E)
    out = jax.block_until_ready(encoder_cnn_forward(*args))
    ref = reference_forward(*args)
    assert out.shape == (N, E)
    assert jnp.allclose(out, ref, atol=2e-3, rtol=2e-3), "mismatch vs reference (small)"

    # Realistic ResNet-152 shapes (C=2048, 7x7 spatial, embed=256): exercises the
    # multi-step C-reduction grid, lane-dense E, and the padding paths.
    N2, C2, H2, W2, E2 = 4, 2048, 7, 7, 256
    args2 = _make_inputs(key_big, N2, C2, H2, W2, E2)
    out2 = jax.block_until_ready(encoder_cnn_forward(*args2))
    ref2 = reference_forward(*args2)
    assert out2.shape == (N2, E2)
    assert jnp.allclose(out2, ref2, atol=2e-3, rtol=2e-3), "mismatch vs reference (real)"

    print("KERNEL_OK")
</pallas_src>

<mosaic_0001>
module attributes {stable_mosaic.version = 11 : i64} {
  func.func @encoder_cnn_kernel(%arg0: i32, %arg1: memref<2x256x128xbf16, #tpu.memory_space<vmem>>, %arg2: memref<128x128xbf16, #tpu.memory_space<vmem>>, %arg3: memref<1x128xf32, #tpu.memory_space<vmem>>, %arg4: memref<1x128xf32, #tpu.memory_space<vmem>>, %arg5: memref<1x128xf32, #tpu.memory_space<vmem>>, %arg6: memref<2x128xf32, #tpu.memory_space<vmem>>, %arg7: memref<2x128xf32, #tpu.memory_space<vmem>>) attributes {dimension_semantics = [#tpu.dimension_semantics<arbitrary>], iteration_bounds = array<i64: 1>, scalar_prefetch = 0 : i64, scratch_operands = 1 : i64, tpu.core_type = #tpu.core_type<tc>, window_params = [{transform_indices = @transform_0, window_bounds = array<i64: 2, 256, 128>}, {transform_indices = @transform_1, window_bounds = array<i64: 128, 128>}, {pipeline_mode = #tpu.pipeline_mode<synchronous>, transform_indices = @transform_2, window_bounds = array<i64: 1, 128>}, {pipeline_mode = #tpu.pipeline_mode<synchronous>, transform_indices = @transform_3, window_bounds = array<i64: 1, 128>}, {pipeline_mode = #tpu.pipeline_mode<synchronous>, transform_indices = @transform_4, window_bounds = array<i64: 1, 128>}, {pipeline_mode = #tpu.pipeline_mode<synchronous>, transform_indices = @transform_5, window_bounds = array<i64: 2, 128>}]} {
    %c0_i32 = arith.constant 0 : i32
    %0 = arith.cmpi eq, %arg0, %c0_i32 : i32
    %1 = arith.extui %0 : i1 to i32
    %c0_i32_0 = arith.constant 0 : i32
    %2 = arith.cmpi ne, %1, %c0_i32_0 : i32
    scf.if %2 {
      %cst_12 = arith.constant 0.000000e+00 : f32
      %15 = vector.broadcast %cst_12 : f32 to vector<2x128xf32>
      %c0_13 = arith.constant 0 : index
      %c0_14 = arith.constant 0 : index
      %16 = vector.load %arg7[%c0_13, %c0_14] : memref<2x128xf32, #tpu.memory_space<vmem>>, vector<2x128xf32>
      tpu.vector_store %arg7[%c0_13, %c0_14], %15 {strides = array<i32>} : memref<2x128xf32, #tpu.memory_space<vmem>>, vector<2x128xf32>,
    } else {
    }
    %c0 = arith.constant 0 : index
    %c0_1 = arith.constant 0 : index
    %c0_2 = arith.constant 0 : index
    %3 = vector.load %arg1[%c0, %c0_1, %c0_2] : memref<2x256x128xbf16, #tpu.memory_space<vmem>>, vector<2x256x128xbf16>
    %4 = arith.extf %3 : vector<2x256x128xbf16> to vector<2x256x128xf32>
    %cst = arith.constant dense<0.000000e+00> : vector<2x128xf32>
    %5 = vector.multi_reduction <add>, %4, %cst [1] : vector<2x256x128xf32> to vector<2x128xf32>
    %c0_3 = arith.constant 0 : index
    %c0_4 = arith.constant 0 : index
    %6 = vector.load %arg7[%c0_3, %c0_4] : memref<2x128xf32, #tpu.memory_space<vmem>>, vector<2x128xf32>
    %c0_5 = arith.constant 0 : index
    %c0_6 = arith.constant 0 : index
    %7 = vector.load %arg2[%c0_5, %c0_6] : memref<128x128xbf16, #tpu.memory_space<vmem>>, vector<128x128xbf16>
    %8 = arith.extf %7 : vector<128x128xbf16> to vector<128x128xf32>
    %cst_7 = arith.constant dense<0.000000e+00> : vector<2x128xf32>
    %9 = tpu.matmul %5, %8, %cst_7 {dimension_numbers = #tpu.dot_dimension_numbers<[1], [0], [0], [1], [0, 0, 1, 1], [], []>} : vector<2x128xf32>, vector<128x128xf32>, vector<2x128xf32> -> vector<2x128xf32>
    %10 = arith.addf %6, %9 : vector<2x128xf32>
    %c0_8 = arith.constant 0 : index
    %c0_9 = arith.constant 0 : index
    %11 = vector.load %arg7[%c0_8, %c0_9] : memref<2x128xf32, #tpu.memory_space<vmem>>, vector<2x128xf32>
    tpu.vector_store %arg7[%c0_8, %c0_9], %10 {strides = array<i32>} : memref<2x128xf32, #tpu.memory_space<vmem>>, vector<2x128xf32>,
    %c0_i32_10 = arith.constant 0 : i32
    %12 = arith.cmpi eq, %arg0, %c0_i32_10 : i32
    %13 = arith.extui %12 : i1 to i32
    %c0_i32_11 = arith.constant 0 : i32
    %14 = arith.cmpi ne, %13, %c0_i32_11 : i32
    scf.if %14 {
      %c0_12 = arith.constant 0 : index
      %c0_13 = arith.constant 0 : index
      %15 = vector.load %arg7[%c0_12, %c0_13] : memref<2x128xf32, #tpu.memory_space<vmem>>, vector<2x128xf32>
      %cst_14 = arith.constant 3.906250e-03 : f32
      %16 = vector.broadcast %cst_14 : f32 to vector<2x128xf32>
      %17 = arith.mulf %15, %16 : vector<2x128xf32>
      %c0_15 = arith.constant 0 : index
      %c0_16 = arith.constant 0 : index
      %18 = vector.load %arg3[%c0_15, %c0_16] : memref<1x128xf32, #tpu.memory_space<vmem>>, vector<1x128xf32>
      %19 = vector.broadcast %18 : vector<1x128xf32> to vector<2x128xf32>
      %20 = arith.addf %17, %19 : vector<2x128xf32>
      %cst_17 = arith.constant dense<0.000000e+00> : vector<128xf32>
      %21 = vector.multi_reduction <add>, %20, %cst_17 [0] : vector<2x128xf32> to vector<128xf32>
      %22 = vector.shape_cast %21 : vector<128xf32> to vector<1x128xf32>
      %cst_18 = arith.constant 2.000000e+00 : f32
      %23 = vector.broadcast %cst_18 : f32 to vector<1x128xf32>
      %24 = arith.divf %22, %23 : vector<1x128xf32>
      %25 = vector.broadcast %24 : vector<1x128xf32> to vector<2x128xf32>
      %26 = arith.subf %20, %25 : vector<2x128xf32>
      %27 = arith.mulf %26, %26 : vector<2x128xf32>
      %cst_19 = arith.constant dense<0.000000e+00> : vector<128xf32>
      %28 = vector.multi_reduction <add>, %27, %cst_19 [0] : vector<2x128xf32> to vector<128xf32>
      %29 = vector.shape_cast %28 : vector<128xf32> to vector<1x128xf32>
      %cst_20 = arith.constant 2.000000e+00 : f32
      %30 = vector.broadcast %cst_20 : f32 to vector<1x128xf32>
      %31 = arith.divf %29, %30 : vector<1x128xf32>
      %32 = vector.broadcast %24 : vector<1x128xf32> to vector<2x128xf32>
      %33 = arith.subf %20, %32 : vector<2x128xf32>
      %cst_21 = arith.constant 9.99999974E-6 : f32
      %34 = vector.broadcast %cst_21 : f32 to vector<1x128xf32>
      %35 = arith.addf %31, %34 : vector<1x128xf32>
      %36 = math.rsqrt %35 : vector<1x128xf32>
      %37 = vector.broadcast %36 : vector<1x128xf32> to vector<2x128xf32>
      %38 = arith.mulf %33, %37 : vector<2x128xf32>
      %c0_22 = arith.constant 0 : index
      %c0_23 = arith.constant 0 : index
      %39 = vector.load %arg4[%c0_22, %c0_23] : memref<1x128xf32, #tpu.memory_space<vmem>>, vector<1x128xf32>
      %40 = vector.broadcast %39 : vector<1x128xf32> to vector<2x128xf32>
      %41 = arith.mulf %40, %38 : vector<2x128xf32>
      %c0_24 = arith.constant 0 : index
      %c0_25 = arith.constant 0 : index
      %42 = vector.load %arg5[%c0_24, %c0_25] : memref<1x128xf32, #tpu.memory_space<vmem>>, vector<1x128xf32>
      %43 = vector.broadcast %42 : vector<1x128xf32> to vector<2x128xf32>
      %44 = arith.addf %41, %43 : vector<2x128xf32>
      %c0_26 = arith.constant 0 : index
      %c0_27 = arith.constant 0 : index
      %45 = vector.load %arg6[%c0_26, %c0_27] : memref<2x128xf32, #tpu.memory_space<vmem>>, vector<2x128xf32>
      tpu.vector_store %arg6[%c0_26, %c0_27], %44 {strides = array<i32>} : memref<2x128xf32, #tpu.memory_space<vmem>>, vector<2x128xf32>,
    } else {
    }
    return
  }
  func.func @transform_0(%arg0: i32) -> (i32, i32, i32) {
    %c0_i32 = arith.constant 0 : i32
    %c0_i32_0 = arith.constant 0 : i32
    %c0_i32_1 = arith.constant 0 : i32
    return %c0_i32, %c0_i32_0, %arg0 : i32, i32, i32
  }
  func.func @transform_1(%arg0: i32) -> (i32, i32) {
    %c0_i32 = arith.constant 0 : i32
    %c0_i32_0 = arith.constant 0 : i32
    return %arg0, %c0_i32 : i32, i32
  }
  func.func @transform_2(%arg0: i32) -> (i32, i32) {
    %c0_i32 = arith.constant 0 : i32
    %c0_i32_0 = arith.constant 0 : i32
    %c0_i32_1 = arith.constant 0 : i32
    return %c0_i32, %c0_i32_0 : i32, i32
  }
  func.func @transform_3(%arg0: i32) -> (i32, i32) {
    %c0_i32 = arith.constant 0 : i32
    %c0_i32_0 = arith.constant 0 : i32
    %c0_i32_1 = arith.constant 0 : i32
    return %c0_i32, %c0_i32_0 : i32, i32
  }
  func.func @transform_4(%arg0: i32) -> (i32, i32) {
    %c0_i32 = arith.constant 0 : i32
    %c0_i32_0 = arith.constant 0 : i32
    %c0_i32_1 = arith.constant 0 : i32
    return %c0_i32, %c0_i32_0 : i32, i32
  }
  func.func @transform_5(%arg0: i32) -> (i32, i32) {
    %c0_i32 = arith.constant 0 : i32
    %c0_i32_0 = arith.constant 0 : i32
    %c0_i32_1 = arith.constant 0 : i32
    return %c0_i32, %c0_i32_0 : i32, i32
  }
}

</mosaic_0001>

<bundles_post_ra>
// kernel: tpu_custom_call.1
= control target key start
LH: loop header
LB: loop body
LE: loop exit
PB: predicated region body
PF: predicated region fallthrough
CT: control target
= control target key end

     0   :  { %10 = vsyncpa [#allocation4], 0  ;;  %s744_s0 = inlined_call_operand.hbm [shape: bf16[2,256,128], index: 0, kind: input, shape index: {}]   ;;  %s745_s1 = inlined_call_operand.hbm [shape: bf16[128,128], index: 1, kind: input, shape index: {}]   ;;  %s746_s2 = inlined_call_operand.vmem [shape: f32[1,128], index: 2, kind: input, shape index: {}]   ;;  %s747_s3 = inlined_call_operand.vmem [shape: f32[1,128], index: 3, kind: input, shape index: {}]   ;;  %s748_s4 = inlined_call_operand.vmem [shape: f32[1,128], index: 4, kind: input, shape index: {}]   ;;  %s749_s5 = inlined_call_operand.hbm [shape: f32[2,128], index: 5, kind: output, shape index: {}]  }
   0x1   :  { %11 = vsyncpa [#allocation7], 0 }
   0x2   :  { %12 = vsyncpa [#allocation5], 0  ;;  %s17_s20 = sshll.u32 %s744_s0, 4  ;;  %s687_s21 = smov [#allocation3]   ;;  %s18_s20 = int_to_ptr.hbm [resolvable:$true] %s17_s20 }
   0x3   :  { %s19_s22 = sshll.u32 %s687_s21, 4  ;;  %s30_s25 = sshll.u32 %s745_s1, 4  ;;  %s20_s22 = int_to_ptr.vmem [resolvable:$true] %s19_s22  ;;  %s31_s25 = int_to_ptr.hbm [resolvable:$true] %s30_s25 }
   0x4   :  { %s688_s26 = smov 64   ;;  %s689_s27 = smov 4  }
   0x5   :  { %25 = dma.hbm_to_vmem [thread:$0]  %s18_s20, 4096, %s20_s22, [#allocation4], %s688_s26, %s688_s26, %s689_s27  }
   0x6   :  { %s690_s28 = smov [#allocation6]  }
   0x7   :  { %s32_s29 = sshll.u32 %s690_s28, 4  ;;  %s33_s29 = int_to_ptr.vmem [resolvable:$true] %s32_s29 }
   0x8   :  { %38 = dma.hbm_to_vmem [thread:$0]  %s31_s25, 1024, %s33_s29, [#allocation7], %s688_s26, %s688_s26, %s689_s27  }
   0x9   :  { %681 = dma.done.wait [#allocation4], 4096  }
   0xa   :  { %682 = vsyncadd [#allocation4], 4294963200 }
   0xb   :  { %683 = dma.done.wait [#allocation7], 1024  }
   0xc   :  { %684 = vsyncadd [#allocation7], 4294966272  ;;  %v594_v0 = vld [vmem:[#allocation6 + $0x38] sm:$0xff]   ;;  %v593_v1 = vld [vmem:[#allocation6 + $0x30] sm:$0xff]   ;;  %vm295_vm0 = vcmask 1041409   ;;  %vm330_vm1 = vcmask 1041408  }
   0xd   :  { %v556_v2 = vunpack.c.h.bf16 %v594_v0  ;;  %v555_v3 = vunpack.c.l.bf16 %v594_v0  ;;  %v552_v4 = vunpack.c.h.bf16 %v593_v1  ;;  %v592_v5 = vld [vmem:[#allocation6 + $0x28] sm:$0xff]   ;;  %v551_v6 = vunpack.c.l.bf16 %v593_v1  ;;  %v591_v8 = vld [vmem:[#allocation6 + $0x20] sm:$0xff]   ;;  %v590_v11 = vld [vmem:[#allocation6 + $0x18] sm:$0xff]   ;;  %s693_s8 = smov [#allocation8]   ;;  %s386_s12 = sshll.u32 %s749_s5, 4  ;;  %s387_s12 = int_to_ptr.hbm [resolvable:$true] %s386_s12 }
   0xe   :  { %v548_v7 = vunpack.c.h.bf16 %v592_v5  ;;  %v547_v9 = vunpack.c.l.bf16 %v592_v5  ;;  %v544_v10 = vunpack.c.h.bf16 %v591_v8  ;;  %v543_v12 = vunpack.c.l.bf16 %v591_v8  ;;  %v398_v13 = vld [vmem:[#allocation3] sm:$0xff]   ;;  %v589_v17 = vld [vmem:[#allocation6 + $0x10] sm:$0xff]   ;;  %v557_v18 = vld [vmem:[#allocation3 + $0x8] sm:$0xff]   ;;  %s384_s9 = sshll.u32 %s693_s8, 4  ;;  %s385_s9 = int_to_ptr.vmem [resolvable:$true] %s384_s9 }
   0xf   :  { %298 = vmatpush.msra.mxu0 %v556_v2  ;;  %v572_v14 = vld [vmem:[#allocation3 + $0x80] sm:$0xff]   ;;  %v540_v15 = vunpack.c.h.bf16 %v590_v11  ;;  %v539_v16 = vunpack.c.l.bf16 %v590_v11  ;;  %v573_v19 = vld [vmem:[#allocation3 + $0x88] sm:$0xff]   ;;  %v399_v20 = vunpack.c.l.bf16 %v398_v13  ;;  %v400_v21 = vunpack.c.h.bf16 %v398_v13  ;;  %v558_v29 = vld [vmem:[#allocation3 + $0x10] sm:$0xff]  }
  0x10   :  { %v463_v22 = vunpack.c.l.bf16 %v572_v14  ;;  %v464_v23 = vunpack.c.h.bf16 %v572_v14  ;;  %v536_v24 = vunpack.c.h.bf16 %v589_v17  ;;  %v588_v25 = vld [vmem:[#allocation6 + $0x8] sm:$0xff]   ;;  %v403_v26 = vunpack.c.l.bf16 %v557_v18  ;;  %v574_v30 = vld [vmem:[#allocation3 + $0x90] sm:$0xff]   ;;  %v526_v36 = vld [vmem:[#allocation6] sm:$0xff]  }
  0x11   :  { %299 = vmatpush.msra.mxu0 %v555_v3  ;;  %v467_v27 = vunpack.c.l.bf16 %v573_v19  ;;  %v535_v28 = vunpack.c.l.bf16 %v589_v17  ;;  %v404_v31 = vunpack.c.h.bf16 %v557_v18  ;;  %v468_v32 = vunpack.c.h.bf16 %v573_v19  ;;  %v559_v42 = vld [vmem:[#allocation3 + $0x18] sm:$0xff]   ;;  %v560_v54 = vld [vmem:[#allocation3 + $0x20] sm:$0xff]   ;;  %v561_v0 = vld [vmem:[#allocation3 + $0x28] sm:$0xff]  }
  0x12   :  { %v186_v33 = vadd.f32 %v400_v21, %v399_v20  ;;  %v223_v34 = vadd.f32 %v464_v23, %v463_v22  ;;  %v532_v35 = vunpack.c.h.bf16 %v588_v25  ;;  %v407_v37 = vunpack.c.l.bf16 %v558_v29  ;;  %v575_v43 = vld [vmem:[#allocation3 + $0x98] sm:$0xff]   ;;  %v576_v55 = vld [vmem:[#allocation3 + $0xa0] sm:$0xff]   ;;  %v577_v1 = vld [vmem:[#allocation3 + $0xa8] sm:$0xff]  }
  0x13   :  { %300 = vmatpush.msra.mxu0 %v552_v4  ;;  %v471_v38 = vunpack.c.l.bf16 %v574_v30  ;;  %v531_v41 = vunpack.c.l.bf16 %v588_v25  ;;  %v408_v44 = vunpack.c.h.bf16 %v558_v29  ;;  %v472_v45 = vunpack.c.h.bf16 %v574_v30  ;;  %v578_v11 = vld [vmem:[#allocation3 + $0xb0] sm:$0xff]   ;;  %v563_v20 = vld [vmem:[#allocation3 + $0x38] sm:$0xff]   ;;  %v564_v30 = vld [vmem:[#allocation3 + $0x40] sm:$0xff]  }
  0x14   :  { %v187_v39 = vadd.f32 %v403_v26, %v186_v33  ;;  %v224_v40 = vadd.f32 %v467_v27, %v223_v34  ;;  %v528_v48 = vunpack.c.h.bf16 %v526_v36  ;;  %v411_v49 = vunpack.c.l.bf16 %v559_v42  ;;  %v579_v21 = vld [vmem:[#allocation3 + $0xb8] sm:$0xff]  }
  0x15   :  { %301 = vmatpush.msra.mxu0 %v551_v6  ;;  %v475_v50 = vunpack.c.l.bf16 %v575_v43  ;;  %v527_v53 = vunpack.c.l.bf16 %v526_v36  ;;  %v412_v56 = vunpack.c.h.bf16 %v559_v42  ;;  %v476_v57 = vunpack.c.h.bf16 %v575_v43 }
  0x16   :  { %v188_v46 = vadd.f32 %v404_v31, %v187_v39  ;;  %v225_v47 = vadd.f32 %v468_v32, %v224_v40  ;;  %v415_v60 = vunpack.c.l.bf16 %v560_v54  ;;  %v479_v61 = vunpack.c.l.bf16 %v576_v55  ;;  %v580_v31 = vld [vmem:[#allocation3 + $0xc0] sm:$0xff]   ;;  %v565_v40 = vld [vmem:[#allocation3 + $0x48] sm:$0xff]  }
  0x17   :  { %302 = vmatpush.msra.mxu0 %v548_v7  ;;  %v416_v2 = vunpack.c.h.bf16 %v560_v54  ;;  %v480_v3 = vunpack.c.h.bf16 %v576_v55  ;;  %v419_v6 = vunpack.c.l.bf16 %v561_v0  ;;  %v483_v7 = vunpack.c.l.bf16 %v577_v1 }
  0x18   :  { %v189_v51 = vadd.f32 %v407_v37, %v188_v46  ;;  %v226_v52 = vadd.f32 %v471_v38, %v225_v47  ;;  %v484_v13 = vunpack.c.h.bf16 %v577_v1  ;;  %v487_v17 = vunpack.c.l.bf16 %v578_v11 }
  0x19   :  { %303 = vmatpush.msra.mxu0 %v547_v9  ;;  %v488_v23 = vunpack.c.h.bf16 %v578_v11  ;;  %v427_v26 = vunpack.c.l.bf16 %v563_v20  ;;  %v491_v27 = vunpack.c.l.bf16 %v579_v21  ;;  %v428_v32 = vunpack.c.h.bf16 %v563_v20 }
  0x1a   :  { %v190_v58 = vadd.f32 %v408_v44, %v189_v51  ;;  %v227_v59 = vadd.f32 %v472_v45, %v226_v52  ;;  %v492_v33 = vunpack.c.h.bf16 %v579_v21  ;;  %v431_v36 = vunpack.c.l.bf16 %v564_v30  ;;  %v582_v51 = vld [vmem:[#allocation3 + $0xd0] sm:$0xff]  }
  0x1b   :  { %304 = vmatpush.msra.mxu0 %v544_v10  ;;  %v562_v10 = vld [vmem:[#allocation3 + $0x30] sm:$0xff]   ;;  %v495_v37 = vunpack.c.l.bf16 %v580_v31  ;;  %v432_v42 = vunpack.c.h.bf16 %v564_v30  ;;  %v496_v43 = vunpack.c.h.bf16 %v580_v31  ;;  %v435_v46 = vunpack.c.l.bf16 %v565_v40 }
  0x1c   :  { %v191_v62 = vadd.f32 %v411_v49, %v190_v58  ;;  %v228_v63 = vadd.f32 %v475_v50, %v227_v59  ;;  %v424_v22 = vunpack.c.h.bf16 %v562_v10  ;;  %v566_v50 = vld [vmem:[#allocation3 + $0x50] sm:$0xff]   ;;  %v436_v52 = vunpack.c.h.bf16 %v565_v40 }
  0x1d   :  { %305 = vmatpush.msra.mxu0 %v543_v12  ;;  %v420_v12 = vunpack.c.h.bf16 %v561_v0 }
  0x1e   :  { %v192_v4 = vadd.f32 %v412_v56, %v191_v62  ;;  %v229_v5 = vadd.f32 %v476_v57, %v228_v63  ;;  %v439_v56 = vunpack.c.l.bf16 %v566_v50  ;;  %v503_v57 = vunpack.c.l.bf16 %v582_v51 }
  0x1f   :  { %306 = vmatpush.msra.mxu0 %v540_v15  ;;  %v440_v62 = vunpack.c.h.bf16 %v566_v50  ;;  %v504_v63 = vunpack.c.h.bf16 %v582_v51 }
  0x20   :  { %v193_v8 = vadd.f32 %v415_v60, %v192_v4  ;;  %v230_v9 = vadd.f32 %v479_v61, %v229_v5  ;;  %v567_v60 = vld [vmem:[#allocation3 + $0x58] sm:$0xff]  }
  0x21   :  { %307 = vmatpush.msra.mxu0 %v539_v16  ;;  %v423_v16 = vunpack.c.l.bf16 %v562_v10  ;;  %v583_v61 = vld [vmem:[#allocation3 + $0xd8] sm:$0xff]  }
  0x22   :  { %v194_v14 = vadd.f32 %v416_v2, %v193_v8  ;;  %v231_v15 = vadd.f32 %v480_v3, %v230_v9  ;;  %v443_v2 = vunpack.c.l.bf16 %v567_v60  ;;  %v507_v3 = vunpack.c.l.bf16 %v583_v61 }
  0x23   :  { %308 = vmatpush.msra.mxu0 %v536_v24  ;;  %v444_v8 = vunpack.c.h.bf16 %v567_v60  ;;  %v508_v9 = vunpack.c.h.bf16 %v583_v61 }
  0x24   :  { %v195_v18 = vadd.f32 %v419_v6, %v194_v14  ;;  %v232_v19 = vadd.f32 %v483_v7, %v231_v15  ;;  %v568_v6 = vld [vmem:[#allocation3 + $0x60] sm:$0xff]  }
  0x25   :  { %309 = vmatpush.msra.mxu0 %v535_v28  ;;  %v584_v7 = vld [vmem:[#allocation3 + $0xe0] sm:$0xff]  }
  0x26   :  { %v196_v24 = vadd.f32 %v420_v12, %v195_v18  ;;  %v233_v25 = vadd.f32 %v484_v13, %v232_v19  ;;  %v447_v12 = vunpack.c.l.bf16 %v568_v6  ;;  %v511_v13 = vunpack.c.l.bf16 %v584_v7 }
  0x27   :  { %310 = vmatpush.msra.mxu0 %v532_v35  ;;  %v448_v18 = vunpack.c.h.bf16 %v568_v6  ;;  %v512_v19 = vunpack.c.h.bf16 %v584_v7  ;;  %v692_v6 = vmov 2.0  }
  0x28   :  { %v197_v28 = vadd.f32 %v423_v16, %v196_v24  ;;  %v234_v29 = vadd.f32 %v487_v17, %v233_v25  ;;  %v569_v16 = vld [vmem:[#allocation3 + $0x68] sm:$0xff]   ;;  %605 = vrcp.f32 %v692_v6 }
  0x29   :  { %311 = vmatpush.msra.mxu0 %v531_v41  ;;  %v581_v41 = vld [vmem:[#allocation3 + $0xc8] sm:$0xff]  }
  0x2a   :  { %v198_v34 = vadd.f32 %v424_v22, %v197_v28  ;;  %v235_v35 = vadd.f32 %v488_v23, %v234_v29  ;;  %v499_v47 = vunpack.c.l.bf16 %v581_v41  ;;  %v585_v17 = vld [vmem:[#allocation3 + $0xe8] sm:$0xff]   ;;  %v691_v22 = vmov 0.0   ;;  %v586_v28 = vld [vmem:[#allocation3 + $0xf0] sm:$0xff]  }
  0x2b   :  { %312 = vmatpush.msra.mxu0 %v528_v48  ;;  %57 = vst [vmem:[#allocation2] sm:$0x3] %v691_v22  ;;  %v451_v23 = vunpack.c.l.bf16 %v569_v16  ;;  %v515_v24 = vunpack.c.l.bf16 %v585_v17  ;;  %v452_v29 = vunpack.c.h.bf16 %v569_v16  ;;  %v516_v30 = vunpack.c.h.bf16 %v585_v17 }
  0x2c   :  { %v199_v38 = vadd.f32 %v427_v26, %v198_v34  ;;  %v236_v39 = vadd.f32 %v491_v27, %v235_v35  ;;  %v570_v27 = vld [vmem:[#allocation3 + $0x70] sm:$0xff]   ;;  %v519_v34 = vunpack.c.l.bf16 %v586_v28  ;;  %v520_v40 = vunpack.c.h.bf16 %v586_v28 }
  0x2d   :  { %313 = vmatpush.msra.mxu0 %v527_v53  ;;  %v500_v53 = vunpack.c.h.bf16 %v581_v41 }
  0x2e   :  { %v200_v44 = vadd.f32 %v428_v32, %v199_v38  ;;  %v237_v45 = vadd.f32 %v492_v33, %v236_v39  ;;  %v455_v33 = vunpack.c.l.bf16 %v570_v27  ;;  %v587_v38 = vld [vmem:[#allocation3 + $0xf8] sm:$0xff]   ;;  %v456_v39 = vunpack.c.h.bf16 %v570_v27 }
  0x30   :  { %v201_v48 = vadd.f32 %v431_v36, %v200_v44  ;;  %v238_v49 = vadd.f32 %v495_v37, %v237_v45  ;;  %v571_v37 = vld [vmem:[#allocation3 + $0x78] sm:$0xff]   ;;  %v523_v44 = vunpack.c.l.bf16 %v587_v38 }
  0x32   :  { %v202_v54 = vadd.f32 %v432_v42, %v201_v48  ;;  %v239_v55 = vadd.f32 %v496_v43, %v238_v49  ;;  %v459_v43 = vunpack.c.l.bf16 %v571_v37  ;;  %v524_v48 = vunpack.c.h.bf16 %v587_v38 }
  0x34   :  { %v203_v58 = vadd.f32 %v435_v46, %v202_v54  ;;  %v240_v59 = vadd.f32 %v499_v47, %v239_v55  ;;  %v460_v47 = vunpack.c.h.bf16 %v571_v37 }
  0x36   :  { %v204_v0 = vadd.f32 %v436_v52, %v203_v58  ;;  %v241_v1 = vadd.f32 %v500_v53, %v240_v59 }
  0x38   :  { %v205_v4 = vadd.f32 %v439_v56, %v204_v0  ;;  %v242_v5 = vadd.f32 %v503_v57, %v241_v1 }
  0x3a   :  { %v206_v10 = vadd.f32 %v440_v62, %v205_v4  ;;  %v243_v11 = vadd.f32 %v504_v63, %v242_v5  ;;  %v260_v4 = vld [vmem:[#allocation2] sm:$0x3] }
  0x3c   :  { %v207_v14 = vadd.f32 %v443_v2, %v206_v10  ;;  %v244_v15 = vadd.f32 %v507_v3, %v243_v11 }
  0x3e   :  { %v208_v20 = vadd.f32 %v444_v8, %v207_v14  ;;  %v245_v21 = vadd.f32 %v508_v9, %v244_v15  ;;  %v606_v8 = vpop.eup %605  ;;  %v602_v9 = vld [vmem:[%s746_s2] ss:$0 sm:$0xff] }
  0x3f   :  { %v339_v10 = vmul.f32 2.0, %v606_v8  ;;  %vm343_vm2 = vweird.f32 %v606_v8 }
  0x40   :  { %v209_v25 = vadd.f32 %v447_v12, %v208_v20  ;;  %v246_v26 = vadd.f32 %v511_v13, %v245_v21 }
  0x41   :  { %v340_v14 = vsub.f32 1.0, %v339_v10 }
  0x42   :  { %v210_v31 = vadd.f32 %v448_v18, %v209_v25  ;;  %v247_v32 = vadd.f32 %v512_v19, %v246_v26 }
  0x43   :  { %v341_v17 = vmul.f32 %v606_v8, %v340_v14 }
  0x44   :  { %v211_v35 = vadd.f32 %v451_v23, %v210_v31  ;;  %v248_v36 = vadd.f32 %v515_v24, %v247_v32 }
  0x45   :  { %v342_v20 = vadd.f32 %v606_v8, %v341_v17 }
  0x46   :  { %v212_v41 = vadd.f32 %v452_v29, %v211_v35  ;;  %v249_v42 = vadd.f32 %v516_v30, %v248_v36 }
  0x47   :  { %v344_v23 = vsel %vm343_vm2, %v606_v8, %v342_v20 }
  0x48   :  { %v213_v45 = vadd.f32 %v455_v33, %v212_v41  ;;  %v250_v46 = vadd.f32 %v519_v34, %v249_v42 }
  0x4a   :  { %v214_v49 = vadd.f32 %v456_v39, %v213_v45  ;;  %v251_v50 = vadd.f32 %v520_v40, %v250_v46  ;;  %v604_v46 = vld [vmem:[%s748_s4] ss:$0 sm:$0xff] }
  0x4c   :  { %v215_v51 = vadd.f32 %v459_v43, %v214_v49  ;;  %v252_v52 = vadd.f32 %v523_v44, %v251_v50  ;;  %v603_v43 = vld [vmem:[%s747_s3] ss:$0 sm:$0xff] }
  0x4e   :  { %v216_v53 = vadd.f32 %v460_v47, %v215_v51  ;;  %v253_v54 = vadd.f32 %v524_v48, %v252_v52 }
  0x50   :  { %v217_v55 = vrot.slane %v216_v53, 4  ;;  %v254_v56 = vrot.slane %v253_v54, 4 }
  0x52   :  { %v218_v57 = vadd.f32 %v217_v55, %v216_v53  ;;  %v255_v58 = vadd.f32 %v254_v56, %v253_v54 }
  0x54   :  { %v219_v59 = vrot.slane %v218_v57, 2  ;;  %v256_v60 = vrot.slane %v255_v58, 2 }
  0x56   :  { %v220_v61 = vadd.f32 %v219_v59, %v218_v57  ;;  %v257_v62 = vadd.f32 %v256_v60, %v255_v58 }
  0x58   :  { %v221_v63 = vrot.slane %v220_v61, 1  ;;  %v258_v0 = vrot.slane %v257_v62, 1 }
  0x5a   :  { %v222_v1 = vadd.f32 %v221_v63, %v220_v61  ;;  %v259_v2 = vadd.f32 %v258_v0, %v257_v62 }
  0x5c   :  { %v296_v3 = vsel %vm295_vm0, %v259_v2, %v222_v1 }
  0x5d   :  { %314 = vmatmul.f32.vlgmr.msra.gmra.mxu0 %v296_v3 }
  0xda   :  { %v315_v5 = vpop.f32.mrf.mxu0 }
  0xdb   :  { %v318_v7 = vadd.f32 %v315_v5, %v260_v4 }
  0xdd   :  { %319 = vst [vmem:[#allocation2] sm:$0x3] %v318_v7 }
  0xe4   :  { %v323_v11 = vld [vmem:[#allocation2] sm:$0x3] }
  0xe5   :  { %v324_v12 = vmul.f32 0.00390625, %v323_v11 }
  0xe7   :  { %v329_v13 = vadd.f32 %v602_v9, %v324_v12 }
  0xe9   :  { %v331_v15 = vsel %vm330_vm1, %v329_v13, 0.0 }
  0xea   :  { %v332_v16 = vrot.slane %v331_v15, 4 }
  0xec   :  { %v333_v18 = vadd.f32 %v332_v16, %v331_v15 }
  0xee   :  { %v334_v19 = vrot.slane %v333_v18, 2 }
  0xf0   :  { %v335_v21 = vadd.f32 %v334_v19, %v333_v18 }
  0xf2   :  { %v336_v22 = vrot.slane %v335_v21, 1 }
  0xf4   :  { %v337_v24 = vadd.f32 %v336_v22, %v335_v21 }
  0xf6   :  { %v345_v25 = vmul.f32 %v344_v23, %v337_v24 }
  0xf8   :  { %v346_v26 = vsub.f32 %v329_v13, %v345_v25 }
  0xfa   :  { %v347_v27 = vmul.f32 %v346_v26, %v346_v26 }
  0xfc   :  { %v348_v28 = vsel %vm330_vm1, %v347_v27, 0.0 }
  0xfd   :  { %v349_v29 = vrot.slane %v348_v28, 4 }
  0xff   :  { %v350_v30 = vadd.f32 %v349_v29, %v348_v28 }
 0x101   :  { %v351_v31 = vrot.slane %v350_v30, 2 }
 0x103   :  { %v352_v32 = vadd.f32 %v351_v31, %v350_v30 }
 0x105   :  { %v353_v33 = vrot.slane %v352_v32, 1 }
 0x107   :  { %v354_v34 = vadd.f32 %v353_v33, %v352_v32 }
 0x109   :  { %v355_v35 = vmul.f32 %v354_v34, %v344_v23 }
 0x10b   :  { %v356_v36 = vadd.f32 1e-05, %v355_v35 }
 0x10d   :  { %607 = vrsqrt.f32 %v356_v36  ;;  %vm363_vm4 = vweird.f32 %v356_v36 }
 0x113   :  { %v608_v37 = vpop.eup %607 }
 0x114   :  { %v358_v38 = vmul.f32 %v608_v37, %v356_v36  ;;  %vm364_vm3 = vweird.f32 %v608_v37 }
 0x115   :  { %vm365_vm5 = vmor %vm363_vm4, %vm364_vm3 }
 0x116   :  { %v359_v39 = vmul.f32 %v608_v37, %v358_v38 }
 0x118   :  { %v360_v40 = vmul.f32 0.5, %v359_v39 }
 0x11a   :  { %v361_v41 = vsub.f32 1.5, %v360_v40 }
 0x11c   :  { %v362_v42 = vmul.f32 %v608_v37, %v361_v41 }
 0x11e   :  { %v366_v44 = vsel %vm365_vm5, %v608_v37, %v362_v42 }
 0x11f   :  { %v367_v45 = vmul.f32 %v366_v44, %v346_v26 }
 0x121   :  { %v372_v47 = vmul.f32 %v603_v43, %v367_v45 }
 0x123   :  { %v377_v48 = vadd.f32 %v604_v46, %v372_v47 }
 0x125   :  { %378 = vst [vmem:[#allocation8] sm:$0x3] %v377_v48 }
 0x126   :  { %389 = dma.vmem_to_hbm [thread:$0]  %s385_s9, 32, %s387_s12, [#allocation5]  }
 0x127   :  { %685 = dma.done.wait [#allocation5], 32  }
 0x128   :  { %686 = vsyncadd [#allocation5], 4294967264 }
 0x129   :  { %394 = vsyncpa [#allocation4], 1 }
 0x12a   :  { %395 = vsyncpa [#allocation7], 1 }
 0x12b   :  { %396 = vsyncpa [#allocation5], 1 }

</bundles_post_ra>
